<compile_context>
chip_gen: v5e
topology: v5e:2x2
jax: 0.10.0
libtpu: 0.0.40
codegen_flags: <defaults>
</compile_context>

<pallas_src>
import numpy as np
import jax
import jax.numpy as jnp
from jax import lax
from jax.experimental import pallas as pl
from jax.experimental.pallas import tpu as pltpu

# ----------------------------- configuration -------------------------------
BATCH = 2
IMG_H = IMG_W = 32           # input image spatial size
SAMPLE_SIZE = 16             # self.sample_size (crop size) — small for demo
SAMPLE_NUM = 10              # random_crop_test(sample_num=10)
PATCH = 8                    # stand-in patch-embed stride/kernel
C_IN = 3
EMBED_DIM = 128              # joint embedding dim (== embedding_dim * 2)
ADAPTER_HID = EMBED_DIM // 2 # Adapter(embedding_dim*2, reduction=2)
N_PROMPTS = 10               # 2 groups of 5 prompts
CTX_LEN = 8
VOCAB = 64
TEXT_WIDTH = 32

OPENAI_CLIP_MEAN = (0.48145466, 0.4578275, 0.40821073)
OPENAI_CLIP_STD = (0.26862954, 0.26130258, 0.27577711)
LOGIT_SCALE = float(np.exp(np.log(1.0 / 0.07)))   # CLIP logit_scale.exp()

N_CROPS = SAMPLE_NUM * BATCH                       # 20
P_PER = (SAMPLE_SIZE // PATCH) ** 2                # patches per crop = 4
FEAT = C_IN * PATCH * PATCH                        # 192


# ------------------------------ fused Pallas kernel -------------------------
def _uniqa_fused_kernel(patches_ref, pool_ref, wproj_ref, bproj_ref,
                        w1_ref, w2_ref, txt1_ref, txt2_ref, score_ref,
                        red_ref, out_ref):
    """Fused UniQA forward.

    patches: [N*P, F]  (sublane-dense)
    pool:    [N, N*P]  (1/P pooling matrix)
    wproj:   [F, D], bproj: [1, D]   (CLIP mean/std folded in)
    w1: [D, H], w2: [H, D]           (Adapter, stored as torch weight.T)
    txt1/2:  [5, D]  (pre-L2-normalized, pre-scaled by logit_scale, per group)
    score:   [1, 5]
    red:     [N, B]  (0.5/SAMPLE_NUM crop-mean matrix; 0.5 group-avg folded in)
    out:     [B, 1]
    """
    # Mean-pool over patches as a matmul: [N, F]
    pooled = jnp.dot(pool_ref[...], patches_ref[...],
                     preferred_element_type=jnp.float32)

    # Projection to joint embedding; the CLIP per-channel normalization is
    # folded into wproj / bproj (exact because the normalization is a
    # per-feature affine and the pooling is a plain mean — do not change the
    # pooling without re-deriving this fold).
    img = jnp.dot(pooled, wproj_ref[...],
                  preferred_element_type=jnp.float32) + bproj_ref[...]   # [N, D]

    # Adapter: Linear(D, D//2, bias=False) -> ReLU -> Linear(D//2, D) -> ReLU
    h = jnp.maximum(jnp.dot(img, w1_ref[...],
                            preferred_element_type=jnp.float32), 0.0)
    a = jnp.maximum(jnp.dot(h, w2_ref[...],
                            preferred_element_type=jnp.float32), 0.0)
    feat = img + a                                                        # residual
    feat = feat * lax.rsqrt(jnp.sum(feat * feat, axis=-1, keepdims=True) + 1e-12)

    score = score_ref[...]                                                # [1, 5]

    def group_score(txt):                                                 # txt: [5, D]
        # logits against one 5-prompt group (text already carries 1/||t|| and
        # logit_scale)
        l = lax.dot_general(feat, txt, (((1,), (1,)), ((), ())),
                            preferred_element_type=jnp.float32)           # [N, 5]
        m = jnp.max(l, axis=-1, keepdims=True)
        e = jnp.exp(l - m)
        num = jnp.sum(e * score, axis=-1, keepdims=True)
        den = jnp.sum(e, axis=-1, keepdims=True)
        return num * pl.reciprocal(den, approx=True)                      # [N, 1]

    s = group_score(txt1_ref[...]) + group_score(txt2_ref[...])           # [N, 1]

    # Fused crop-mean (with the 0.5 group-average folded in): [B, 1] = red.T @ s
    out_ref[...] = lax.dot_general(red_ref[...], s, (((0,), (0,)), ((), ())),
                                   preferred_element_type=jnp.float32)


def uniqa_fused(patches2d, pool_mat, w_proj, b_proj, w1, w2,
                txt1_scaled, txt2_scaled, score_level, red_mat):
    NP, F = patches2d.shape
    N = pool_mat.shape[0]
    D = w_proj.shape[1]
    H = w1.shape[1]
    B = red_mat.shape[1]
    return pl.pallas_call(
        _uniqa_fused_kernel,
        out_shape=jax.ShapeDtypeStruct((B, 1), jnp.float32),
        grid=(1,),
        in_specs=[
            pl.BlockSpec((NP, F), lambda i: (0, 0)),
            pl.BlockSpec((N, NP), lambda i: (0, 0)),
            pl.BlockSpec((F, D), lambda i: (0, 0)),
            pl.BlockSpec((1, D), lambda i: (0, 0)),
            pl.BlockSpec((D, H), lambda i: (0, 0)),
            pl.BlockSpec((H, D), lambda i: (0, 0)),
            pl.BlockSpec((5, D), lambda i: (0, 0)),
            pl.BlockSpec((5, D), lambda i: (0, 0)),
            pl.BlockSpec((1, 5), lambda i: (0, 0)),
            pl.BlockSpec((N, B), lambda i: (0, 0)),
        ],
        out_specs=pl.BlockSpec((B, 1), lambda i: (0, 0)),
        compiler_params=pltpu.CompilerParams(
            dimension_semantics=("arbitrary",)),
    )(patches2d, pool_mat, w_proj, b_proj, w1, w2, txt1_scaled, txt2_scaled,
      score_level, red_mat)


# --------------------------------- glue -------------------------------------
def patchify2d(x, ps):
    # x: [N, C, H, W] -> [N * num_patches, C*ps*ps], features flattened (c, ph, pw)
    N, C, H, W = x.shape
    gh, gw = H // ps, W // ps
    x = x.reshape(N, C, gh, ps, gw, ps)
    x = x.transpose(0, 2, 4, 1, 3, 5)            # [N, gh, gw, C, ps, ps]
    return x.reshape(N * gh * gw, C * ps * ps)


def init_params():
    key = jax.random.PRNGKey(0)
    k1, k2, k3, k4, k5 = jax.random.split(key, 5)
    F = FEAT

    mean_vec = np.repeat(np.array(OPENAI_CLIP_MEAN, np.float32), PATCH * PATCH)     # [F]
    invstd_vec = 1.0 / np.repeat(np.array(OPENAI_CLIP_STD, np.float32), PATCH * PATCH)

    # Stand-in CLIP image encoder weights (conv-as-matmul), with the CLIP
    # normalization folded into them: w' = invstd * w, b' = -(mean*invstd) @ w.
    w_patch = 0.02 * jax.random.normal(k1, (F, EMBED_DIM), jnp.float32)
    w_proj = jnp.asarray(invstd_vec)[:, None] * w_patch                              # [F, D]
    b_proj = -(jnp.asarray(mean_vec * invstd_vec)[None, :] @ w_patch)                # [1, D]

    # Adapter weights stored as [in, out] (i.e. torch Linear weight.T)
    adapter_w1 = 0.05 * jax.random.normal(k2, (EMBED_DIM, ADAPTER_HID), jnp.float32)
    adapter_w2 = 0.05 * jax.random.normal(k3, (ADAPTER_HID, EMBED_DIM), jnp.float32)

    # TODO(synk): CLIP text transformer / BPE tokenizer not translated; a
    # mean-pooled token-embedding stand-in produces the 10 prompt features.
    tok_emb = 0.02 * jax.random.normal(k4, (VOCAB, TEXT_WIDTH), jnp.float32)
    text_proj = 0.02 * jax.random.normal(k5, (TEXT_WIDTH, EMBED_DIM), jnp.float32)
    tokens = jnp.asarray(
        np.random.RandomState(1).randint(0, VOCAB, size=(N_PROMPTS, CTX_LEN)),
        jnp.int32)
    txt = tok_emb[tokens].mean(axis=1) @ text_proj                                   # [T, D]
    txt = txt * lax.rsqrt(jnp.sum(txt * txt, axis=-1, keepdims=True) + 1e-12)
    txt_scaled = LOGIT_SCALE * txt        # constant per forward pass: prefold scale
    txt1_scaled = txt_scaled[0:5]         # "quality" prompt group
    txt2_scaled = txt_scaled[5:10]        # "content" prompt group

    # Constant pooling matrix (mean over P patches per crop) and crop-mean
    # matrix (0.5 group-average folded in).
    pool_np = np.zeros((N_CROPS, N_CROPS * P_PER), np.float32)
    for n in range(N_CROPS):
        pool_np[n, n * P_PER:(n + 1) * P_PER] = 1.0 / P_PER
    red_np = np.zeros((N_CROPS, BATCH), np.float32)
    for s in range(SAMPLE_NUM):
        for b in range(BATCH):
            red_np[s * BATCH + b, b] = 0.5 / SAMPLE_NUM

    return {
        "w_proj": w_proj,
        "b_proj": b_proj,
        "adapter_w1": adapter_w1,
        "adapter_w2": adapter_w2,
        "txt1_scaled": txt1_scaled,
        "txt2_scaled": txt2_scaled,
        "score_level": jnp.array([[0.2, 0.4, 0.6, 0.8, 1.0]], jnp.float32),
        "pool_mat": jnp.asarray(pool_np),
        "red_mat": jnp.asarray(red_np),
    }


def uniqa_forward(x, params, crop_offsets):
    """random_crop_test + forward_image. x: [B, 3, H, W] in [0, 1]. -> [B, 1]"""
    crops = [x[:, :, i:i + SAMPLE_SIZE, j:j + SAMPLE_SIZE] for (i, j) in crop_offsets]
    cropped = jnp.concatenate(crops, axis=0)         # [SAMPLE_NUM*B, 3, S, S]
    patches2d = patchify2d(cropped, PATCH)           # [N*P, F]  (sublane-dense)
    return uniqa_fused(patches2d, params["pool_mat"], params["w_proj"],
                       params["b_proj"], params["adapter_w1"],
                       params["adapter_w2"], params["txt1_scaled"],
                       params["txt2_scaled"], params["score_level"],
                       params["red_mat"])


if __name__ == "__main__":
    params = init_params()

    # deterministic example input (image in [0, 1], NCHW)
    x = jax.random.uniform(jax.random.PRNGKey(0),
                           (BATCH, C_IN, IMG_H, IMG_W), jnp.float32)

    # deterministic "random" crop offsets (replaces torch.randint)
    rs = np.random.RandomState(0)
    crop_offsets = tuple(
        (int(rs.randint(0, IMG_H - SAMPLE_SIZE + 1)),
         int(rs.randint(0, IMG_W - SAMPLE_SIZE + 1)))
        for _ in range(SAMPLE_NUM)
    )

    fwd = jax.jit(lambda inp: uniqa_forward(inp, params, crop_offsets))
    out = jax.block_until_ready(fwd(x))
    assert out.shape == (BATCH, 1)
    assert bool(jnp.all(jnp.isfinite(out)))
    print("KERNEL_OK")
</pallas_src>

<mosaic_0001>
module attributes {stable_mosaic.version = 11 : i64} {
  func.func @_uniqa_fused_kernel(%arg0: i32, %arg1: memref<80x192xf32, #tpu.memory_space<vmem>>, %arg2: memref<20x80xf32, #tpu.memory_space<vmem>>, %arg3: memref<192x128xf32, #tpu.memory_space<vmem>>, %arg4: memref<1x128xf32, #tpu.memory_space<vmem>>, %arg5: memref<128x64xf32, #tpu.memory_space<vmem>>, %arg6: memref<64x128xf32, #tpu.memory_space<vmem>>, %arg7: memref<5x128xf32, #tpu.memory_space<vmem>>, %arg8: memref<5x128xf32, #tpu.memory_space<vmem>>, %arg9: memref<1x5xf32, #tpu.memory_space<vmem>>, %arg10: memref<20x2xf32, #tpu.memory_space<vmem>>, %arg11: memref<2x1xf32, #tpu.memory_space<vmem>>) attributes {dimension_semantics = [#tpu.dimension_semantics<arbitrary>], iteration_bounds = array<i64: 1>, scalar_prefetch = 0 : i64, scratch_operands = 0 : i64, tpu.core_type = #tpu.core_type<tc>, window_params = [{pipeline_mode = #tpu.pipeline_mode<synchronous>, transform_indices = @transform_0, window_bounds = array<i64: 80, 192>}, {pipeline_mode = #tpu.pipeline_mode<synchronous>, transform_indices = @transform_1, window_bounds = array<i64: 20, 80>}, {pipeline_mode = #tpu.pipeline_mode<synchronous>, transform_indices = @transform_2, window_bounds = array<i64: 192, 128>}, {pipeline_mode = #tpu.pipeline_mode<synchronous>, transform_indices = @transform_3, window_bounds = array<i64: 1, 128>}, {pipeline_mode = #tpu.pipeline_mode<synchronous>, transform_indices = @transform_4, window_bounds = array<i64: 128, 64>}, {pipeline_mode = #tpu.pipeline_mode<synchronous>, transform_indices = @transform_5, window_bounds = array<i64: 64, 128>}, {pipeline_mode = #tpu.pipeline_mode<synchronous>, transform_indices = @transform_6, window_bounds = array<i64: 5, 128>}, {pipeline_mode = #tpu.pipeline_mode<synchronous>, transform_indices = @transform_7, window_bounds = array<i64: 5, 128>}, {pipeline_mode = #tpu.pipeline_mode<synchronous>, transform_indices = @transform_8, window_bounds = array<i64: 1, 5>}, {pipeline_mode = #tpu.pipeline_mode<synchronous>, transform_indices = @transform_9, window_bounds = array<i64: 20, 2>}, {pipeline_mode = #tpu.pipeline_mode<synchronous>, transform_indices = @transform_10, window_bounds = array<i64: 2, 1>}]} {
    %c0 = arith.constant 0 : index
    %c0_0 = arith.constant 0 : index
    %0 = vector.load %arg2[%c0, %c0_0] : memref<20x80xf32, #tpu.memory_space<vmem>>, vector<20x80xf32>
    %c0_1 = arith.constant 0 : index
    %c0_2 = arith.constant 0 : index
    %1 = vector.load %arg1[%c0_1, %c0_2] : memref<80x192xf32, #tpu.memory_space<vmem>>, vector<80x192xf32>
    %cst = arith.constant dense<0.000000e+00> : vector<20x192xf32>
    %2 = tpu.matmul %0, %1, %cst {dimension_numbers = #tpu.dot_dimension_numbers<[1], [0], [0], [1], [0, 0, 1, 1], [], []>} : vector<20x80xf32>, vector<80x192xf32>, vector<20x192xf32> -> vector<20x192xf32>
    %c0_3 = arith.constant 0 : index
    %c0_4 = arith.constant 0 : index
    %3 = vector.load %arg3[%c0_3, %c0_4] : memref<192x128xf32, #tpu.memory_space<vmem>>, vector<192x128xf32>
    %cst_5 = arith.constant dense<0.000000e+00> : vector<20x128xf32>
    %4 = tpu.matmul %2, %3, %cst_5 {dimension_numbers = #tpu.dot_dimension_numbers<[1], [0], [0], [1], [0, 0, 1, 1], [], []>} : vector<20x192xf32>, vector<192x128xf32>, vector<20x128xf32> -> vector<20x128xf32>
    %c0_6 = arith.constant 0 : index
    %c0_7 = arith.constant 0 : index
    %5 = vector.load %arg4[%c0_6, %c0_7] : memref<1x128xf32, #tpu.memory_space<vmem>>, vector<1x128xf32>
    %6 = vector.broadcast %5 : vector<1x128xf32> to vector<20x128xf32>
    %7 = arith.addf %4, %6 : vector<20x128xf32>
    %c0_8 = arith.constant 0 : index
    %c0_9 = arith.constant 0 : index
    %8 = vector.load %arg5[%c0_8, %c0_9] : memref<128x64xf32, #tpu.memory_space<vmem>>, vector<128x64xf32>
    %cst_10 = arith.constant dense<0.000000e+00> : vector<20x64xf32>
    %9 = tpu.matmul %7, %8, %cst_10 {dimension_numbers = #tpu.dot_dimension_numbers<[1], [0], [0], [1], [0, 0, 1, 1], [], []>} : vector<20x128xf32>, vector<128x64xf32>, vector<20x64xf32> -> vector<20x64xf32>
    %cst_11 = arith.constant 0.000000e+00 : f32
    %10 = vector.broadcast %cst_11 : f32 to vector<20x64xf32>
    %11 = arith.maximumf %9, %10 : vector<20x64xf32>
    %c0_12 = arith.constant 0 : index
    %c0_13 = arith.constant 0 : index
    %12 = vector.load %arg6[%c0_12, %c0_13] : memref<64x128xf32, #tpu.memory_space<vmem>>, vector<64x128xf32>
    %cst_14 = arith.constant dense<0.000000e+00> : vector<20x128xf32>
    %13 = tpu.matmul %11, %12, %cst_14 {dimension_numbers = #tpu.dot_dimension_numbers<[1], [0], [0], [1], [0, 0, 1, 1], [], []>} : vector<20x64xf32>, vector<64x128xf32>, vector<20x128xf32> -> vector<20x128xf32>
    %cst_15 = arith.constant 0.000000e+00 : f32
    %14 = vector.broadcast %cst_15 : f32 to vector<20x128xf32>
    %15 = arith.maximumf %13, %14 : vector<20x128xf32>
    %16 = arith.addf %7, %15 : vector<20x128xf32>
    %17 = arith.mulf %16, %16 : vector<20x128xf32>
    %cst_16 = arith.constant dense<0.000000e+00> : vector<20xf32>
    %18 = vector.multi_reduction <add>, %17, %cst_16 [1] : vector<20x128xf32> to vector<20xf32>
    %19 = vector.shape_cast %18 : vector<20xf32> to vector<20x1xf32>
    %cst_17 = arith.constant 9.99999996E-13 : f32
    %20 = vector.broadcast %cst_17 : f32 to vector<20x1xf32>
    %21 = arith.addf %19, %20 : vector<20x1xf32>
    %22 = math.rsqrt %21 : vector<20x1xf32>
    %23 = vector.broadcast %22 : vector<20x1xf32> to vector<20x128xf32>
    %24 = arith.mulf %16, %23 : vector<20x128xf32>
    %c0_18 = arith.constant 0 : index
    %c0_19 = arith.constant 0 : index
    %25 = vector.load %arg9[%c0_18, %c0_19] : memref<1x5xf32, #tpu.memory_space<vmem>>, vector<1x5xf32>
    %c0_20 = arith.constant 0 : index
    %c0_21 = arith.constant 0 : index
    %26 = vector.load %arg7[%c0_20, %c0_21] : memref<5x128xf32, #tpu.memory_space<vmem>>, vector<5x128xf32>
    %cst_22 = arith.constant dense<0.000000e+00> : vector<20x5xf32>
    %27 = tpu.matmul %24, %26, %cst_22 {dimension_numbers = #tpu.dot_dimension_numbers<[1], [1], [0], [0], [0, 0, 1, 0], [], []>} : vector<20x128xf32>, vector<5x128xf32>, vector<20x5xf32> -> vector<20x5xf32>
    %cst_23 = arith.constant dense<0xFF800000> : vector<20xf32>
    %28 = vector.multi_reduction <maximumf>, %27, %cst_23 [1] : vector<20x5xf32> to vector<20xf32>
    %29 = vector.shape_cast %28 : vector<20xf32> to vector<20x1xf32>
    %30 = vector.broadcast %29 : vector<20x1xf32> to vector<20x5xf32>
    %31 = arith.subf %27, %30 : vector<20x5xf32>
    %32 = math.exp %31 : vector<20x5xf32>
    %33 = vector.broadcast %25 : vector<1x5xf32> to vector<20x5xf32>
    %34 = arith.mulf %32, %33 : vector<20x5xf32>
    %cst_24 = arith.constant dense<0.000000e+00> : vector<20xf32>
    %35 = vector.multi_reduction <add>, %34, %cst_24 [1] : vector<20x5xf32> to vector<20xf32>
    %36 = vector.shape_cast %35 : vector<20xf32> to vector<20x1xf32>
    %cst_25 = arith.constant dense<0.000000e+00> : vector<20xf32>
    %37 = vector.multi_reduction <add>, %32, %cst_25 [1] : vector<20x5xf32> to vector<20xf32>
    %38 = vector.shape_cast %37 : vector<20xf32> to vector<20x1xf32>
    %39 = tpu.reciprocal %38 {approx = true} : vector<20x1xf32> -> vector<20x1xf32>
    %40 = arith.mulf %36, %39 : vector<20x1xf32>
    %c0_26 = arith.constant 0 : index
    %c0_27 = arith.constant 0 : index
    %41 = vector.load %arg8[%c0_26, %c0_27] : memref<5x128xf32, #tpu.memory_space<vmem>>, vector<5x128xf32>
    %cst_28 = arith.constant dense<0.000000e+00> : vector<20x5xf32>
    %42 = tpu.matmul %24, %41, %cst_28 {dimension_numbers = #tpu.dot_dimension_numbers<[1], [1], [0], [0], [0, 0, 1, 0], [], []>} : vector<20x128xf32>, vector<5x128xf32>, vector<20x5xf32> -> vector<20x5xf32>
    %cst_29 = arith.constant dense<0xFF800000> : vector<20xf32>
    %43 = vector.multi_reduction <maximumf>, %42, %cst_29 [1] : vector<20x5xf32> to vector<20xf32>
    %44 = vector.shape_cast %43 : vector<20xf32> to vector<20x1xf32>
    %45 = vector.broadcast %44 : vector<20x1xf32> to vector<20x5xf32>
    %46 = arith.subf %42, %45 : vector<20x5xf32>
    %47 = math.exp %46 : vector<20x5xf32>
    %48 = vector.broadcast %25 : vector<1x5xf32> to vector<20x5xf32>
    %49 = arith.mulf %47, %48 : vector<20x5xf32>
    %cst_30 = arith.constant dense<0.000000e+00> : vector<20xf32>
    %50 = vector.multi_reduction <add>, %49, %cst_30 [1] : vector<20x5xf32> to vector<20xf32>
    %51 = vector.shape_cast %50 : vector<20xf32> to vector<20x1xf32>
    %cst_31 = arith.constant dense<0.000000e+00> : vector<20xf32>
    %52 = vector.multi_reduction <add>, %47, %cst_31 [1] : vector<20x5xf32> to vector<20xf32>
    %53 = vector.shape_cast %52 : vector<20xf32> to vector<20x1xf32>
    %54 = tpu.reciprocal %53 {approx = true} : vector<20x1xf32> -> vector<20x1xf32>
    %55 = arith.mulf %51, %54 : vector<20x1xf32>
    %56 = arith.addf %40, %55 : vector<20x1xf32>
    %c0_32 = arith.constant 0 : index
    %c0_33 = arith.constant 0 : index
    %57 = vector.load %arg10[%c0_32, %c0_33] : memref<20x2xf32, #tpu.memory_space<vmem>>, vector<20x2xf32>
    %cst_34 = arith.constant dense<0.000000e+00> : vector<2x1xf32>
    %58 = tpu.matmul %57, %56, %cst_34 {dimension_numbers = #tpu.dot_dimension_numbers<[0], [0], [1], [1], [0, 1, 1, 1], [], []>} : vector<20x2xf32>, vector<20x1xf32>, vector<2x1xf32> -> vector<2x1xf32>
    %c0_35 = arith.constant 0 : index
    %c0_36 = arith.constant 0 : index
    %59 = vector.load %arg11[%c0_35, %c0_36] : memref<2x1xf32, #tpu.memory_space<vmem>>, vector<2x1xf32>
    tpu.vector_store %arg11[%c0_35, %c0_36], %58 {strides = array<i32>} : memref<2x1xf32, #tpu.memory_space<vmem>>, vector<2x1xf32>,
    return
  }
  func.func @transform_0(%arg0: i32) -> (i32, i32) {
    %c0_i32 = arith.constant 0 : i32
    %c0_i32_0 = arith.constant 0 : i32
    %c0_i32_1 = arith.constant 0 : i32
    return %c0_i32, %c0_i32_0 : i32, i32
  }
  func.func @transform_1(%arg0: i32) -> (i32, i32) {
    %c0_i32 = arith.constant 0 : i32
    %c0_i32_0 = arith.constant 0 : i32
    %c0_i32_1 = arith.constant 0 : i32
    return %c0_i32, %c0_i32_0 : i32, i32
  }
  func.func @transform_2(%arg0: i32) -> (i32, i32) {
    %c0_i32 = arith.constant 0 : i32
    %c0_i32_0 = arith.constant 0 : i32
    %c0_i32_1 = arith.constant 0 : i32
    return %c0_i32, %c0_i32_0 : i32, i32
  }
  func.func @transform_3(%arg0: i32) -> (i32, i32) {
    %c0_i32 = arith.constant 0 : i32
    %c0_i32_0 = arith.constant 0 : i32
    %c0_i32_1 = arith.constant 0 : i32
    return %c0_i32, %c0_i32_0 : i32, i32
  }
  func.func @transform_4(%arg0: i32) -> (i32, i32) {
    %c0_i32 = arith.constant 0 : i32
    %c0_i32_0 = arith.constant 0 : i32
    %c0_i32_1 = arith.constant 0 : i32
    return %c0_i32, %c0_i32_0 : i32, i32
  }
  func.func @transform_5(%arg0: i32) -> (i32, i32) {
    %c0_i32 = arith.constant 0 : i32
    %c0_i32_0 = arith.constant 0 : i32
    %c0_i32_1 = arith.constant 0 : i32
    return %c0_i32, %c0_i32_0 : i32, i32
  }
  func.func @transform_6(%arg0: i32) -> (i32, i32) {
    %c0_i32 = arith.constant 0 : i32
    %c0_i32_0 = arith.constant 0 : i32
    %c0_i32_1 = arith.constant 0 : i32
    return %c0_i32, %c0_i32_0 : i32, i32
  }
  func.func @transform_7(%arg0: i32) -> (i32, i32) {
    %c0_i32 = arith.constant 0 : i32
    %c0_i32_0 = arith.constant 0 : i32
    %c0_i32_1 = arith.constant 0 : i32
    return %c0_i32, %c0_i32_0 : i32, i32
  }
  func.func @transform_8(%arg0: i32) -> (i32, i32) {
    %c0_i32 = arith.constant 0 : i32
    %c0_i32_0 = arith.constant 0 : i32
    %c0_i32_1 = arith.constant 0 : i32
    return %c0_i32, %c0_i32_0 : i32, i32
  }
  func.func @transform_9(%arg0: i32) -> (i32, i32) {
    %c0_i32 = arith.constant 0 : i32
    %c0_i32_0 = arith.constant 0 : i32
    %c0_i32_1 = arith.constant 0 : i32
    return %c0_i32, %c0_i32_0 : i32, i32
  }
  func.func @transform_10(%arg0: i32) -> (i32, i32) {
    %c0_i32 = arith.constant 0 : i32
    %c0_i32_0 = arith.constant 0 : i32
    %c0_i32_1 = arith.constant 0 : i32
    return %c0_i32, %c0_i32_0 : i32, i32
  }
}

</mosaic_0001>

<bundles_post_ra>
// kernel: _lambda_.1
= control target key start
LH: loop header
LB: loop body
LE: loop exit
PB: predicated region body
PF: predicated region fallthrough
CT: control target
= control target key end

     0   :  { %vm58_vm0 = vcmask 654336   ;;  %vm148_vm1 = vcmask 523264   ;;  %vm311_vm2 = vcmask 1043456   ;;  %vm379_vm12 = vcmask 39936   ;;  %s943_s0 = inlined_call_operand.vmem [shape: f32[80,192], index: 0, kind: input, shape index: {}]   ;;  %s944_s2 = inlined_call_operand.vmem [shape: f32[192,128], index: 2, kind: input, shape index: {}]   ;;  %s945_s1 = inlined_call_operand.vmem [shape: f32[20,80], index: 1, kind: input, shape index: {}]   ;;  %s946_s3 = inlined_call_operand.vmem [shape: f32[1,128], index: 3, kind: input, shape index: {}]   ;;  %s947_s4 = inlined_call_operand.vmem [shape: f32[128,64], index: 4, kind: input, shape index: {}]   ;;  %s948_s5 = inlined_call_operand.vmem [shape: f32[64,128], index: 5, kind: input, shape index: {}]   ;;  %s949_s7 = inlined_call_operand.vmem [shape: f32[5,128], index: 7, kind: input, shape index: {}]   ;;  %s950_s6 = inlined_call_operand.vmem [shape: f32[5,128], index: 6, kind: input, shape index: {}]   ;;  %s951_s8 = inlined_call_operand.vmem [shape: f32[1,5], index: 8, kind: input, shape index: {}]   ;;  %s952_s9 = inlined_call_operand.vmem [shape: f32[20,2], index: 9, kind: input, shape index: {}]   ;;  %s953_s10 = inlined_call_operand.vmem [shape: f32[2,1], index: 10, kind: output, shape index: {}]  }
   0x1   :  { %v56_v0 = vld [vmem:[%s943_s0 + $0x90] sm:$0xff]  ;;  %v54_v1 = vld [vmem:[%s943_s0 + $0x80] sm:$0xff]  ;;  %v57_v2 = vld [vmem:[%s943_s0 + $0x98] sm:$0xff]  ;;  %vm386_vm13 = vcmask 35840   ;;  %vm539_vm14 = vcmask 162816   ;;  %vm566_vm15 = vcmask 1024  }
   0x2   :  { %74 = vmatpush.msra.mxu0 %v56_v0  ;;  %100 = vmatpush.msra.mxu1 %v57_v2  ;;  %v55_v3 = vld [vmem:[%s943_s0 + $0x88] sm:$0xff]  ;;  %v52_v4 = vld [vmem:[%s943_s0 + $0x70] sm:$0xff]  ;;  %v53_v5 = vld [vmem:[%s943_s0 + $0x78] sm:$0xff] }
   0x3   :  { %v50_v6 = vld [vmem:[%s943_s0 + $0x60] sm:$0xff]  ;;  %v51_v7 = vld [vmem:[%s943_s0 + $0x68] sm:$0xff]  ;;  %v48_v8 = vld [vmem:[%s943_s0 + $0x50] sm:$0xff] }
   0x4   :  { %75 = vmatpush.msra.mxu0 %v54_v1  ;;  %101 = vmatpush.msra.mxu1 %v55_v3  ;;  %v49_v9 = vld [vmem:[%s943_s0 + $0x58] sm:$0xff]  ;;  %v46_v11 = vld [vmem:[%s943_s0 + $0x40] sm:$0xff]  ;;  %v47_v12 = vld [vmem:[%s943_s0 + $0x48] sm:$0xff] }
   0x5   :  { %v135_v10 = vld [vmem:[%s944_s2 + $0x78] sm:$0xff]  ;;  %v134_v13 = vld [vmem:[%s944_s2 + $0x70] sm:$0xff]  ;;  %v133_v14 = vld [vmem:[%s944_s2 + $0x68] sm:$0xff] }
   0x6   :  { %76 = vmatpush.msra.mxu0 %v52_v4  ;;  %102 = vmatpush.msra.mxu1 %v53_v5  ;;  %v44_v15 = vld [vmem:[%s943_s0 + $0x30] sm:$0xff]  ;;  %v45_v16 = vld [vmem:[%s943_s0 + $0x38] sm:$0xff]  ;;  %v132_v17 = vld [vmem:[%s944_s2 + $0x60] sm:$0xff] }
   0x7   :  { %158 = vmatpush.msra.mxu2 %v135_v10  ;;  %v143_v18 = vld [vmem:[%s944_s2 + $0xb8] sm:$0xff]  ;;  %v142_v19 = vld [vmem:[%s944_s2 + $0xb0] sm:$0xff]  ;;  %v42_v20 = vld [vmem:[%s943_s0 + $0x20] sm:$0xff] }
   0x8   :  { %77 = vmatpush.msra.mxu0 %v50_v6  ;;  %103 = vmatpush.msra.mxu1 %v51_v7  ;;  %v43_v21 = vld [vmem:[%s943_s0 + $0x28] sm:$0xff]  ;;  %v131_v22 = vld [vmem:[%s944_s2 + $0x58] sm:$0xff]  ;;  %v40_v24 = vld [vmem:[%s943_s0 + $0x10] sm:$0xff] }
   0x9   :  { %159 = vmatpush.msra.mxu2 %v134_v13  ;;  %192 = vmatpush.msra.mxu3 %v143_v18  ;;  %v141_v23 = vld [vmem:[%s944_s2 + $0xa8] sm:$0xff]  ;;  %v41_v25 = vld [vmem:[%s943_s0 + $0x18] sm:$0xff]  ;;  %v130_v26 = vld [vmem:[%s944_s2 + $0x50] sm:$0xff] }
   0xa   :  { %78 = vmatpush.msra.mxu0 %v48_v8  ;;  %104 = vmatpush.msra.mxu1 %v49_v9  ;;  %v140_v27 = vld [vmem:[%s944_s2 + $0xa0] sm:$0xff]  ;;  %v39_v29 = vld [vmem:[%s943_s0 + $0x8] sm:$0xff]  ;;  %v139_v32 = vld [vmem:[%s944_s2 + $0x98] sm:$0xff] }
   0xb   :  { %160 = vmatpush.msra.mxu2 %v133_v14  ;;  %193 = vmatpush.msra.mxu3 %v142_v19  ;;  %v38_v28 = vld [vmem:[%s943_s0] sm:$0xff]  ;;  %v129_v31 = vld [vmem:[%s944_s2 + $0x48] sm:$0xff]  ;;  %v138_v34 = vld [vmem:[%s944_s2 + $0x90] sm:$0xff] }
   0xc   :  { %79 = vmatpush.msra.mxu0 %v46_v11  ;;  %105 = vmatpush.msra.mxu1 %v47_v12  ;;  %v35_v30 = vld [vmem:[%s945_s1] sm:$0xff]  ;;  %v127_v35 = vld [vmem:[%s944_s2 + $0x38] sm:$0xff]  ;;  %v126_v36 = vld [vmem:[%s944_s2 + $0x30] sm:$0xff] }
   0xd   :  { %161 = vmatpush.msra.mxu2 %v132_v17  ;;  %194 = vmatpush.msra.mxu3 %v141_v23  ;;  %v128_v33 = vld [vmem:[%s944_s2 + $0x40] sm:$0xff]  ;;  %v36_v37 = vld [vmem:[%s945_s1 + $0x8] sm:$0xff]  ;;  %v123_v40 = vld [vmem:[%s944_s2 + $0x18] sm:$0xff] }
   0xe   :  { %80 = vmatpush.msra.mxu0 %v44_v15  ;;  %106 = vmatpush.msra.mxu1 %v45_v16  ;;  %v125_v38 = vld [vmem:[%s944_s2 + $0x28] sm:$0xff]  ;;  %v124_v39 = vld [vmem:[%s944_s2 + $0x20] sm:$0xff]  ;;  %v122_v41 = vld [vmem:[%s944_s2 + $0x10] sm:$0xff] }
   0xf   :  { %162 = vmatpush.msra.mxu2 %v131_v22  ;;  %195 = vmatpush.msra.mxu3 %v140_v27  ;;  %v37_v42 = vld [vmem:[%s945_s1 + $0x10] sm:$0xf]  ;;  %v121_v43 = vld [vmem:[%s944_s2 + $0x8] sm:$0xff]  ;;  %v120_v44 = vld [vmem:[%s944_s2] sm:$0xff] }
  0x10   :  { %81 = vmatpush.msra.mxu0 %v42_v20  ;;  %107 = vmatpush.msra.mxu1 %v43_v21  ;;  %v137_v45 = vld [vmem:[%s944_s2 + $0x88] sm:$0xff]  ;;  %v136_v46 = vld [vmem:[%s944_s2 + $0x80] sm:$0xff]  ;;  %v225_v47 = vld [vmem:[%s947_s4 + $0x78] sm:$0xff] }
  0x11   :  { %163 = vmatpush.msra.mxu2 %v130_v26  ;;  %196 = vmatpush.msra.mxu3 %v139_v32  ;;  %v224_v48 = vld [vmem:[%s947_s4 + $0x70] sm:$0xff]  ;;  %v223_v49 = vld [vmem:[%s947_s4 + $0x68] sm:$0xff]  ;;  %v222_v50 = vld [vmem:[%s947_s4 + $0x60] sm:$0xff] }
  0x12   :  { %82 = vmatpush.msra.mxu0 %v40_v24  ;;  %108 = vmatpush.msra.mxu1 %v41_v25  ;;  %v221_v51 = vld [vmem:[%s947_s4 + $0x58] sm:$0xff]  ;;  %v220_v52 = vld [vmem:[%s947_s4 + $0x50] sm:$0xff]  ;;  %v219_v53 = vld [vmem:[%s947_s4 + $0x48] sm:$0xff] }
  0x13   :  { %164 = vmatpush.msra.mxu2 %v129_v31  ;;  %197 = vmatpush.msra.mxu3 %v138_v34  ;;  %v218_v54 = vld [vmem:[%s947_s4 + $0x40] sm:$0xff]  ;;  %v217_v55 = vld [vmem:[%s947_s4 + $0x38] sm:$0xff]  ;;  %v216_v58 = vld [vmem:[%s947_s4 + $0x30] sm:$0xff] }
  0x14   :  { %83 = vmatpush.msra.mxu0 %v38_v28  ;;  %109 = vmatpush.msra.mxu1 %v39_v29  ;;  %v215_v59 = vld [vmem:[%s947_s4 + $0x28] sm:$0xff]  ;;  %v214_v60 = vld [vmem:[%s947_s4 + $0x20] sm:$0xff]  ;;  %v213_v61 = vld [vmem:[%s947_s4 + $0x18] sm:$0xff] }
  0x15   :  { %572 = vmatmul.msk.f32.vlgmr.msra.gmra.mxu0 %vm58_vm0, %v35_v30  ;;  %575 = vmatmul.msk.f32.vlgmr.msra.gmra.mxu1 %vm58_vm0, %v35_v30  ;;  %v212_v2 = vld [vmem:[%s947_s4 + $0x10] sm:$0xff]  ;;  %v211_v3 = vld [vmem:[%s947_s4 + $0x8] sm:$0xff]  ;;  %v210_v4 = vld [vmem:[%s947_s4] sm:$0xff] }
  0x16   :  { %165 = vmatpush.msra.mxu2 %v128_v33  ;;  %198 = vmatpush.msra.mxu3 %v137_v45  ;;  %v262_v5 = vld [vmem:[%s948_s5 + $0x38] sm:$0xff]  ;;  %v261_v6 = vld [vmem:[%s948_s5 + $0x30] sm:$0xff]  ;;  %v260_v7 = vld [vmem:[%s948_s5 + $0x28] sm:$0xff] }
  0x17   :  { %280 = vmatpush.msrb.mxu0 %v262_v5  ;;  %v259_v8 = vld [vmem:[%s948_s5 + $0x20] sm:$0xff]  ;;  %v258_v9 = vld [vmem:[%s948_s5 + $0x18] sm:$0xff]  ;;  %v257_v11 = vld [vmem:[%s948_s5 + $0x10] sm:$0xff] }
  0x18   :  { %166 = vmatpush.msra.mxu2 %v127_v35  ;;  %199 = vmatpush.msra.mxu3 %v136_v46  ;;  %v587_v10 = vld [vmem:[%s946_s3] ss:$0 sm:$0xff]  ;;  %v256_v12 = vld [vmem:[%s948_s5 + $0x8] sm:$0xff] }
  0x19   :  { %281 = vmatpush.msrb.mxu0 %v261_v6  ;;  %v255_v25 = vld [vmem:[%s948_s5] sm:$0xff] }
  0x1a   :  { %167 = vmatpush.msra.mxu2 %v126_v36  ;;  %226 = vmatpush.msrb.mxu3 %v225_v47  ;;  %v429_v32 = vld [vmem:[%s949_s7] sm:$0x1f] }
  0x1b   :  { %282 = vmatpush.msrb.mxu0 %v260_v7  ;;  %v352_v46 = vld [vmem:[%s950_s6] sm:$0x1f] }
  0x1c   :  { %168 = vmatpush.msra.mxu2 %v125_v38  ;;  %227 = vmatpush.msrb.mxu3 %v224_v48 }
  0x1d   :  { %573 = vmatmul.msk.f32.gmra.mxu0 %vm58_vm0, %v36_v37  ;;  %576 = vmatmul.msk.f32.gmra.mxu1 %vm58_vm0, %v36_v37 }
  0x1e   :  { %169 = vmatpush.msra.mxu2 %v124_v39  ;;  %228 = vmatpush.msrb.mxu3 %v223_v49 }
  0x1f   :  { %283 = vmatpush.msrb.mxu0 %v259_v8  ;;  %368 = vmatpush.xpose.msrb.mxu1 %v352_v46 }
  0x20   :  { %170 = vmatpush.msra.mxu2 %v123_v40  ;;  %229 = vmatpush.msrb.mxu3 %v222_v50 }
  0x21   :  { %284 = vmatpush.msrb.mxu0 %v258_v9 }
  0x22   :  { %171 = vmatpush.msra.mxu2 %v122_v41  ;;  %230 = vmatpush.msrb.mxu3 %v221_v51 }
  0x23   :  { %285 = vmatpush.msrb.mxu0 %v257_v11 }
  0x24   :  { %172 = vmatpush.msra.mxu2 %v121_v43  ;;  %231 = vmatpush.msrb.mxu3 %v220_v52 }
  0x25   :  { %574 = vmatmul.msk.f32.gmra.mxu0 %vm58_vm0, %v37_v42  ;;  %577 = vmatmul.msk.f32.gmra.mxu1 %vm58_vm0, %v37_v42 }
  0x26   :  { %173 = vmatpush.msra.mxu2 %v120_v44  ;;  %232 = vmatpush.msrb.mxu3 %v219_v53 }
  0x27   :  { %286 = vmatpush.msrb.mxu0 %v256_v12 }
  0x28   :  { %233 = vmatpush.msrb.mxu3 %v218_v54  ;;  %445 = vmatpush.xpose.msrb.mxu2 %v429_v32 }
  0x29   :  { %287 = vmatpush.msrb.mxu0 %v255_v25 }
  0x2a   :  { %234 = vmatpush.msrb.mxu3 %v217_v55 }
  0x2c   :  { %235 = vmatpush.msrb.mxu3 %v216_v58 }
  0x2e   :  { %236 = vmatpush.msrb.mxu3 %v215_v59 }
  0x30   :  { %237 = vmatpush.msrb.mxu3 %v214_v60 }
  0x32   :  { %238 = vmatpush.msrb.mxu3 %v213_v61 }
  0x34   :  { %239 = vmatpush.msrb.mxu3 %v212_v2 }
  0x36   :  { %240 = vmatpush.msrb.mxu3 %v211_v3 }
  0x38   :  { %241 = vmatpush.msrb.mxu3 %v210_v4 }
  0x92   :  { %v85_v56 = vpop.f32.mrf.mxu0  ;;  %v111_v57 = vpop.f32.mrf.mxu1 }
  0x93   :  { %174 = vmatmul.f32.vlgmr.msra.gmra.mxu2 %v85_v56  ;;  %578 = vmatmul.msk.f32.vlgmr.msra.gmra.mxu3 %vm148_vm1, %v111_v57 }
  0x9a   :  { %v88_v62 = vpop.f32.mrf.mxu0  ;;  %v114_v63 = vpop.f32.mrf.mxu1 }
  0x9b   :  { %177 = vmatmul.f32.gmra.mxu2 %v88_v62  ;;  %579 = vmatmul.msk.f32.gmra.mxu3 %vm148_vm1, %v114_v63 }
  0xa2   :  { %v91_v0 = vpop.f32.mrf.mxu0  ;;  %v117_v1 = vpop.f32.mrf.mxu1 }
  0xa3   :  { %180 = vmatmul.f32.gmra.mxu2 %v91_v0  ;;  %580 = vmatmul.msk.f32.gmra.mxu3 %vm148_vm1, %v117_v1 }
 0x116   :  { %v175_v13 = vpop.f32.mrf.mxu2  ;;  %v201_v14 = vpop.f32.mrf.mxu3 }
 0x117   :  { %v176_v15 = vadd.f32 %v587_v10, %v175_v13 }
 0x119   :  { %v202_v16 = vadd.f32 %v201_v14, %v176_v15 }
 0x11b   :  { %242 = vmatmul.f32.vlgmr.msrb.gmra.mxu3 %v202_v16 }
 0x11e   :  { %v178_v17 = vpop.f32.mrf.mxu2  ;;  %v204_v18 = vpop.f32.mrf.mxu3 }
 0x11f   :  { %v179_v19 = vadd.f32 %v587_v10, %v178_v17 }
 0x121   :  { %v205_v20 = vadd.f32 %v204_v18, %v179_v19 }
 0x123   :  { %245 = vmatmul.f32.gmra.mxu3 %v205_v20 }
 0x126   :  { %v181_v21 = vpop.f32.mrf.mxu2  ;;  %v207_v22 = vpop.f32.mrf.mxu3 }
 0x127   :  { %v182_v23 = vadd.f32 %v587_v10, %v181_v21 }
 0x129   :  { %v208_v24 = vadd.f32 %v207_v22, %v182_v23 }
 0x12b   :  { %248 = vmatmul.f32.gmra.mxu3 %v208_v24 }
 0x19e   :  { %v243_v26 = vpop.f32.mrf.mxu3 }
 0x19f   :  { %v252_v27 = vmax.f32 %v243_v26, 0.0 }
 0x1a1   :  { %581 = vmatmul.msk.f32.vlgmr.msrb.gmra.mxu0 %vm148_vm1, %v252_v27 }
 0x1a6   :  { %v246_v28 = vpop.f32.mrf.mxu3 }
 0x1a7   :  { %v253_v29 = vmax.f32 %v246_v28, 0.0 }
 0x1a9   :  { %582 = vmatmul.msk.f32.gmra.mxu0 %vm148_vm1, %v253_v29 }
 0x1ae   :  { %v249_v30 = vpop.f32.mrf.mxu3 }
 0x1af   :  { %v254_v31 = vmax.f32 %v249_v30, 0.0 }
 0x1b1   :  { %583 = vmatmul.msk.f32.gmra.mxu0 %vm148_vm1, %v254_v31 }
 0x21e   :  { %v289_v33 = vpop.f32.mrf.mxu0 }
 0x21f   :  { %v298_v34 = vmax.f32 %v289_v33, 0.0 }
 0x221   :  { %v301_v35 = vadd.f32 %v298_v34, %v202_v16 }
 0x223   :  { %v304_v36 = vmul.f32 %v301_v35, %v301_v35 }
 0x225   :  { %307 = vadd.xlane.f32.xlu0 %v304_v36 }
 0x226   :  { %v292_v37 = vpop.f32.mrf.mxu0 }
 0x227   :  { %v299_v38 = vmax.f32 %v292_v37, 0.0 }
 0x229   :  { %v302_v39 = vadd.f32 %v299_v38, %v205_v20  ;;  %v588_v38 = vld [vmem:[%s951_s8] ss:$0 sm:$0xff] }
 0x22b   :  { %v305_v40 = vmul.f32 %v302_v39, %v302_v39 }
 0x22d   :  { %309 = vadd.xlane.f32.xlu0 %v305_v40 }
 0x22e   :  { %v295_v41 = vpop.f32.mrf.mxu0 }
 0x22f   :  { %v300_v42 = vmax.f32 %v295_v41, 0.0 }
 0x231   :  { %v303_v43 = vadd.f32 %v300_v42, %v208_v24 }
 0x233   :  { %v306_v44 = vmul.f32 %v303_v43, %v303_v43 }
 0x235   :  { %v312_v45 = vsel %vm311_vm2, %v306_v44, 0.0 }
 0x236   :  { %313 = vadd.xlane.f32.xlu1 %v312_v45 }
 0x298   :  { %v308_v47 = vpop.xlane.xlu0 %307 }
 0x299   :  { %v315_v48 = vadd.f32 1e-12, %v308_v47 }
 0x29b   :  { %589 = vrsqrt.f32 %v315_v48  ;;  %vm324_vm4 = vweird.f32 %v315_v48 }
 0x2a0   :  { %v310_v49 = vpop.xlane.xlu0 %309 }
 0x2a1   :  { %v590_v50 = vpop.eup %589  ;;  %v316_v51 = vadd.f32 1e-12, %v310_v49 }
 0x2a2   :  { %v319_v52 = vmul.f32 %v590_v50, %v315_v48  ;;  %vm325_vm3 = vweird.f32 %v590_v50 }
 0x2a3   :  { %591 = vrsqrt.f32 %v316_v51  ;;  %vm326_vm5 = vmor %vm324_vm4, %vm325_vm3  ;;  %vm334_vm7 = vweird.f32 %v316_v51 }
 0x2a4   :  { %v320_v53 = vmul.f32 %v590_v50, %v319_v52 }
 0x2a6   :  { %v321_v54 = vmul.f32 0.5, %v320_v53 }
 0x2a8   :  { %v322_v55 = vsub.f32 1.5, %v321_v54 }
 0x2a9   :  { %v592_v56 = vpop.eup %591  ;;  %v314_v57 = vpop.xlane.xlu1 %313 }
 0x2aa   :  { %v329_v58 = vmul.f32 %v592_v56, %v316_v51  ;;  %v317_v59 = vadd.f32 1e-12, %v314_v57  ;;  %v323_v60 = vmul.f32 %v590_v50, %v322_v55  ;;  %vm335_vm6 = vweird.f32 %v592_v56 }
 0x2ab   :  { %vm336_vm8 = vmor %vm334_vm7, %vm335_vm6 }
 0x2ac   :  { %v330_v61 = vmul.f32 %v592_v56, %v329_v58  ;;  %593 = vrsqrt.f32 %v317_v59  ;;  %v327_v62 = vsel %vm326_vm5, %v590_v50, %v323_v60  ;;  %vm344_vm10 = vweird.f32 %v317_v59 }
 0x2ad   :  { %v348_v63 = vmul.f32 %v327_v62, %v301_v35 }
 0x2ae   :  { %v331_v0 = vmul.f32 0.5, %v330_v61 }
 0x2af   :  { %369 = vmatmul.f32.vlgmr.msrb.gmra.mxu1 %v348_v63  ;;  %446 = vmatmul.f32.vlgmr.msrb.gmra.mxu2 %v348_v63 }
 0x2b0   :  { %v332_v1 = vsub.f32 1.5, %v331_v0 }
 0x2b2   :  { %v594_v2 = vpop.eup %593  ;;  %v333_v3 = vmul.f32 %v592_v56, %v332_v1 }
 0x2b3   :  { %v339_v4 = vmul.f32 %v594_v2, %v317_v59  ;;  %vm345_vm9 = vweird.f32 %v594_v2 }
 0x2b4   :  { %v337_v5 = vsel %vm336_vm8, %v592_v56, %v333_v3  ;;  %vm346_vm11 = vmor %vm344_vm10, %vm345_vm9 }
 0x2b5   :  { %v340_v6 = vmul.f32 %v594_v2, %v339_v4  ;;  %v349_v7 = vmul.f32 %v337_v5, %v302_v39  ;;  %v504_v4 = vld [vmem:[%s952_s9] sm:$0xff]  ;;  %v505_v5 = vld [vmem:[%s952_s9 + $0x8] sm:$0xff] }
 0x2b7   :  { %v341_v8 = vmul.f32 0.5, %v340_v6  ;;  %372 = vmatmul.f32.gmra.mxu1 %v349_v7  ;;  %449 = vmatmul.f32.gmra.mxu2 %v349_v7  ;;  %v506_v6 = vld [vmem:[%s952_s9 + $0x10] sm:$0xf] }
 0x2b9   :  { %v342_v9 = vsub.f32 1.5, %v341_v8 }
 0x2bb   :  { %v343_v10 = vmul.f32 %v594_v2, %v342_v9 }
 0x2bd   :  { %v347_v11 = vsel %vm346_vm11, %v594_v2, %v343_v10 }
 0x2be   :  { %v350_v12 = vmul.f32 %v347_v11, %v303_v43 }
 0x2c0   :  { %375 = vmatmul.f32.gmra.mxu1 %v350_v12  ;;  %452 = vmatmul.f32.gmra.mxu2 %v350_v12 }
 0x32c   :  { %v370_v13 = vpop.f32.mrf.mxu1 }
 0x32d   :  { %v380_v23 = vsel %vm379_vm12, %v370_v13, -inf }
 0x332   :  { %v447_v14 = vpop.f32.mrf.mxu2 }
 0x333   :  { %v456_v24 = vsel %vm379_vm12, %v447_v14, -inf }
 0x334   :  { %v373_v15 = vpop.f32.mrf.mxu1 }
 0x335   :  { %v383_v16 = vsel %vm379_vm12, %v373_v15, -inf }
 0x336   :  { %384 = vmax.xlane.f32.xlu2 %v383_v16 }
 0x33a   :  { %v450_v17 = vpop.f32.mrf.mxu2 }
 0x33b   :  { %v459_v18 = vsel %vm379_vm12, %v450_v17, -inf }
 0x33c   :  { %460 = vmax.xlane.f32.xlu0 %v459_v18 }
 0x33d   :  { %v376_v19 = vpop.f32.mrf.mxu1 }
 0x33e   :  { %v387_v20 = vsel %vm386_vm13, %v376_v19, -inf }
 0x33f   :  { %388 = vmax.xlane.f32.xlu1 %v387_v20 }
 0x343   :  { %v453_v21 = vpop.f32.mrf.mxu2 }
 0x344   :  { %v462_v22 = vsel %vm386_vm13, %v453_v21, -inf }
 0x345   :  { %463 = vmax.xlane.f32.xlu2 %v462_v22 }
 0x347   :  { %381 = vmax.xlane.f32.xlu1 %v380_v23 }
 0x34d   :  { %457 = vmax.xlane.f32.xlu2 %v456_v24 }
 0x3a9   :  { %v385_v26 = vpop.xlane.xlu2 %384 }
 0x3aa   :  { %v391_v44 = vsub.f32 %v373_v15, %v385_v26 }
 0x3ac   :  { %v395_v49 = vmul.f32 1.442695, %v391_v44 }
 0x3af   :  { %v461_v25 = vpop.xlane.xlu0 %460 }
 0x3b0   :  { %v466_v27 = vsub.f32 %v450_v17, %v461_v25 }
 0x3b2   :  { %v470_v28 = vmul.f32 1.442695, %v466_v27  ;;  %v389_v29 = vpop.xlane.xlu1 %388 }
 0x3b3   :  { %v392_v32 = vsub.f32 %v376_v19, %v389_v29 }
 0x3b4   :  { %595 = vpow2.f32 %v470_v28 }
 0x3b5   :  { %v397_v39 = vmul.f32 1.442695, %v392_v32 }
 0x3b8   :  { %v464_v30 = vpop.xlane.xlu2 %463 }
 0x3b9   :  { %v467_v36 = vsub.f32 %v453_v21, %v464_v30 }
 0x3ba   :  { %v596_v31 = vpop.eup %595  ;;  %v382_v33 = vpop.xlane.xlu1 %381 }
 0x3bb   :  { %v390_v34 = vsub.f32 %v370_v13, %v382_v33  ;;  %v489_v35 = vsel %vm379_vm12, %v596_v31, 0.0  ;;  %v475_v40 = vmul.f32 %v596_v31, %v588_v38  ;;  %v472_v41 = vmul.f32 1.442695, %v467_v36 }
 0x3bc   :  { %490 = vadd.xlane.f32.xlu0 %v489_v35 }
 0x3bd   :  { %v393_v37 = vmul.f32 1.442695, %v390_v34  ;;  %v480_v46 = vsel %vm379_vm12, %v475_v40, 0.0 }
 0x3bf   :  { %597 = vpow2.f32 %v393_v37 }
 0x3c0   :  { %v458_v42 = vpop.xlane.xlu2 %457  ;;  %599 = vpow2.f32 %v397_v39 }
 0x3c1   :  { %v465_v43 = vsub.f32 %v447_v14, %v458_v42  ;;  %601 = vpow2.f32 %v472_v41 }
 0x3c3   :  { %v468_v45 = vmul.f32 1.442695, %v465_v43 }
 0x3c4   :  { %481 = vadd.xlane.f32.xlu0 %v480_v46 }
 0x3c5   :  { %v598_v47 = vpop.eup %597  ;;  %603 = vpow2.f32 %v468_v45 }
 0x3c6   :  { %v414_v48 = vsel %vm379_vm12, %v598_v47, 0.0  ;;  %v600_v50 = vpop.eup %599  ;;  %605 = vpow2.f32 %v395_v49  ;;  %v402_v63 = vmul.f32 %v598_v47, %v588_v38 }
 0x3c7   :  { %415 = vadd.xlane.f32.xlu1 %v414_v48  ;;  %v602_v51 = vpop.eup %601  ;;  %v420_v53 = vsel %vm386_vm13, %v600_v50, 0.0  ;;  %v404_v56 = vmul.f32 %v600_v50, %v588_v38 }
 0x3c8   :  { %v492_v55 = vsel %vm386_vm13, %v602_v51, 0.0  ;;  %v476_v58 = vmul.f32 %v602_v51, %v588_v38  ;;  %v405_v1 = vsel %vm379_vm12, %v402_v63, 0.0 }
 0x3c9   :  { %v411_v59 = vsel %vm386_vm13, %v404_v56, 0.0 }
 0x3ca   :  { %v483_v61 = vsel %vm386_vm13, %v476_v58, 0.0 }
 0x3cb   :  { %v604_v52 = vpop.eup %603 }
 0x3cc   :  { %421 = vadd.xlane.f32.xlu0 %v420_v53  ;;  %v486_v54 = vsel %vm379_vm12, %v604_v52, 0.0  ;;  %v606_v57 = vpop.eup %605  ;;  %v474_v2 = vmul.f32 %v604_v52, %v588_v38 }
 0x3cd   :  { %487 = vadd.xlane.f32.xlu2 %v486_v54  ;;  %v417_v60 = vsel %vm379_vm12, %v606_v57, 0.0  ;;  %v403_v62 = vmul.f32 %v606_v57, %v588_v38 }
 0x3ce   :  { %v477_v3 = vsel %vm379_vm12, %v474_v2, 0.0 }
 0x3cf   :  { %493 = vadd.xlane.f32.xlu1 %v492_v55  ;;  %v408_v0 = vsel %vm379_vm12, %v403_v62, 0.0 }
 0x3d4   :  { %412 = vadd.xlane.f32.xlu0 %v411_v59 }
 0x3d5   :  { %418 = vadd.xlane.f32.xlu2 %v417_v60 }
 0x3d7   :  { %484 = vadd.xlane.f32.xlu1 %v483_v61 }
 0x3dd   :  { %409 = vadd.xlane.f32.xlu2 %v408_v0 }
 0x3df   :  { %406 = vadd.xlane.f32.xlu1 %v405_v1 }
 0x3e5   :  { %478 = vadd.xlane.f32.xlu2 %v477_v3 }
 0x3fd   :  { %507 = vxpose.xlu0.b32.start [1/3] (short) (narrow) %v504_v4, 8 }
 0x405   :  { %508 = vxpose.xlu0.b32.cont [2/3] (short) (narrow) %v505_v5, 8 }
 0x40d   :  { %509 = vxpose.xlu0.b32.end [3/3] (short) (narrow) %v506_v6, 8 }
 0x42f   :  { %v491_v7 = vpop.xlane.xlu0 %490 }
 0x437   :  { %v482_v8 = vpop.xlane.xlu0 %481 }
 0x43a   :  { %v416_v9 = vpop.xlane.xlu1 %415 }
 0x43f   :  { %v422_v10 = vpop.xlane.xlu0 %421 }
 0x440   :  { %v488_v11 = vpop.xlane.xlu2 %487  ;;  %607 = vrcp.f32 %v422_v10 }
 0x442   :  { %v494_v12 = vpop.xlane.xlu1 %493 }
 0x443   :  { %609 = vrcp.f32 %v494_v12 }
 0x444   :  { %611 = vrcp.f32 %v491_v7 }
 0x446   :  { %v608_v13 = vpop.eup %607 }
 0x447   :  { %v413_v14 = vpop.xlane.xlu0 %412 }
 0x448   :  { %v419_v15 = vpop.xlane.xlu2 %418  ;;  %v428_v18 = vmul.f32 %v608_v13, %v413_v14 }
 0x449   :  { %v610_v16 = vpop.eup %609  ;;  %613 = vrcp.f32 %v419_v15 }
 0x44a   :  { %v485_v17 = vpop.xlane.xlu1 %484  ;;  %v612_v21 = vpop.eup %611  ;;  %615 = vrcp.f32 %v416_v9 }
 0x44b   :  { %v500_v19 = vmul.f32 %v610_v16, %v485_v17  ;;  %v499_v24 = vmul.f32 %v612_v21, %v482_v8  ;;  %617 = vrcp.f32 %v488_v11 }
 0x44d   :  { %v503_v20 = vadd.f32 %v500_v19, %v428_v18 }
 0x44f   :  { %v614_v22 = vpop.eup %613  ;;  %584 = vmatpush.msk.msra.mxu0 %vm311_vm2, %v503_v20 }
 0x450   :  { %v410_v23 = vpop.xlane.xlu2 %409  ;;  %v616_v28 = vpop.eup %615 }
 0x451   :  { %v427_v25 = vmul.f32 %v614_v22, %v410_v23  ;;  %v618_v29 = vpop.eup %617 }
 0x452   :  { %v407_v27 = vpop.xlane.xlu1 %406 }
 0x453   :  { %v502_v26 = vadd.f32 %v499_v24, %v427_v25  ;;  %v426_v31 = vmul.f32 %v616_v28, %v407_v27 }
 0x455   :  { %560 = vmatpush.msra.mxu0 %v502_v26 }
 0x458   :  { %v479_v30 = vpop.xlane.xlu2 %478 }
 0x459   :  { %v498_v32 = vmul.f32 %v618_v29, %v479_v30 }
 0x45b   :  { %v501_v33 = vadd.f32 %v498_v32, %v426_v31 }
 0x45d   :  { %561 = vmatpush.msra.mxu0 %v501_v33 }
 0x4a1   :  { %v523_v34 = vpop.trf.xlu0 }
 0x4a2   :  { %585 = vmatmul.msk.f32.vlgmr.msra.gmra.mxu0 %vm539_vm14, %v523_v34 }
 0x51f   :  { %v563_v35 = vpop.f32.mrf.mxu0 }
 0x520   :  { %567 = vst.msk [vmem:[%s953_s10] sm:$0x3] %vm566_vm15, %v563_v35 }

</bundles_post_ra>
